<compile_context>
chip_gen: v6e
topology: v6e:2x2x1
jax: 0.10.0
libtpu: 0.0.40
codegen_flags: <defaults>
</compile_context>

<pallas_src>
import functools
import math

import numpy as np

import jax
import jax.numpy as jnp
from jax.experimental import pallas as pl
from jax.experimental.pallas import tpu as pltpu


def _structured_mats(num_heads, head_dim):
    """Constant 0/1 (and scale) matrices carrying the per-token head structure.

    Wide-intermediate column layout: c = q*E + k*D + d
    (q = query head, k = key head, d = head-dim index), E = H*D.
    """
    H, D = num_heads, head_dim
    E = H * D
    HE, HH = H * E, H * H
    scale = 1.0 / math.sqrt(D)

    g = np.zeros((E, HE), np.float32)      # replicate query head q over all key slots k
    r2 = np.zeros((HE, HH), np.float32)    # per-(q,k) reduction over d (scale folded in)
    hsum = np.zeros((HH, HH), np.float32)  # softmax group-sum over k within query head q
    nmat = np.zeros((HH, HE), np.float32)  # probability (q,k) -> every d slot of (q,k)
    r3 = np.zeros((HE, E), np.float32)     # weighted sum over k back to e = q*D + d

    for q in range(H):
        for k in range(H):
            for kp in range(H):
                hsum[q * H + k, q * H + kp] = 1.0
            for d in range(D):
                c = q * E + k * D + d
                g[q * D + d, c] = 1.0
                r2[c, q * H + k] = scale
                nmat[q * H + k, c] = 1.0
                r3[c, q * D + d] = 1.0
    return g, r2, hsum, nmat, r3


def _mhca_kernel(img_ref, text_ref,
                 w_it_ref, b_it_ref,
                 w_ti_ref, b_ti_ref,
                 w_out_ref, b_out_ref,
                 g_ref, r2_ref, hs_ref, n_ref, r3_ref,
                 out_ref, *, num_heads):
    H = num_heads
    bb, S, E = img_ref.shape
    rows = bb * S

    img = img_ref[...]                       # (bb, S, E) f32
    text = text_ref[...][:, 0, :]            # (bb, E)    f32
    x2 = img.reshape(rows, E)                # (rows, E)

    # ---- fused K/V projections: bf16 MXU matmuls, f32 accumulation ----
    kv_it = jnp.dot(x2.astype(jnp.bfloat16), w_it_ref[...],
                    preferred_element_type=jnp.float32) + b_it_ref[...]   # (rows, 2E)
    kv_ti = jnp.dot(text.astype(jnp.bfloat16), w_ti_ref[...],
                    preferred_element_type=jnp.float32) + b_ti_ref[...]   # (bb, 2E)

    # Broadcast text-side quantities to one row per img token.
    t_rows = jnp.broadcast_to(text[:, None, :], (bb, S, E)).reshape(rows, E)
    kv_ti_rows = jnp.broadcast_to(kv_ti[:, None, :],
                                  (bb, S, 2 * E)).reshape(rows, 2 * E)

    # Stack both attention branches along rows (one MXU stream):
    #   rows [0, rows)      -> img branch  (Q = text token, K/V = img projections)
    #   rows [rows, 2*rows) -> text branch (Q = img token,  K/V = text projections)
    q_all = jnp.concatenate([t_rows, x2], axis=0)                 # (2R, E)
    kv_all = jnp.concatenate([kv_it, kv_ti_rows], axis=0)         # (2R, 2E)
    k_all, v_all = kv_all[:, :E], kv_all[:, E:]

    g = g_ref[...]
    r2 = r2_ref[...]
    hs = hs_ref[...]
    nmat = n_ref[...]
    r3 = r3_ref[...]

    # Per-token softmax over the key-head axis.  All cross-head bookkeeping is
    # expressed as exact f32 matmuls against small constant 0/1 matrices in a
    # lane-dense (2R, H*E) layout -- no per-head loops or narrow lane slices.
    q_rep = jnp.dot(q_all, g, preferred_element_type=jnp.float32)          # (2R, H*E)
    prod = q_rep * jnp.tile(k_all, (1, H))                                 # (2R, H*E)
    s = jnp.dot(prod, r2, preferred_element_type=jnp.float32)              # (2R, H*H)
    m = jnp.max(s, axis=-1, keepdims=True)                                 # safe shift
    e = jnp.exp(s - m)
    den = jnp.dot(e, hs, preferred_element_type=jnp.float32)               # group sums
    p = e * pl.reciprocal(den, approx=True)                                # probs (2R, H*H)
    w = jnp.dot(p, nmat, preferred_element_type=jnp.float32) * jnp.tile(v_all, (1, H))
    o = jnp.dot(w, r3, preferred_element_type=jnp.float32)                 # (2R, E)

    # ---- output projection: one bf16 dot over both branches, one store ----
    y = jnp.dot(o.astype(jnp.bfloat16), w_out_ref[...],
                preferred_element_type=jnp.float32) + b_out_ref[...]       # (2R, E)
    out_ref[...] = y.reshape(2, bb, S, E)


def mhca_forward(img, text, params, *, num_heads, batch_block=None):
    B, S, E = img.shape
    assert text.shape == (B, 1, E), "module semantics require text seq length 1"
    assert E % num_heads == 0
    H = num_heads
    D = E // H
    bb = B if batch_block is None else batch_block
    assert B % bb == 0

    w_itk, b_itk = params["img_to_text_keys"]
    w_itv, b_itv = params["img_to_text_values"]
    w_tik, b_tik = params["text_to_img_keys"]
    w_tiv, b_tiv = params["text_to_img_values"]
    w_out, b_out = params["fc_out"]

    # Fused projection weights (E, 2E), bf16 operands; biases stay f32.
    w_it = jnp.concatenate([w_itk, w_itv], axis=1).astype(jnp.bfloat16)
    b_it = jnp.concatenate([b_itk, b_itv]).reshape(1, 2 * E).astype(jnp.float32)
    w_ti = jnp.concatenate([w_tik, w_tiv], axis=1).astype(jnp.bfloat16)
    b_ti = jnp.concatenate([b_tik, b_tiv]).reshape(1, 2 * E).astype(jnp.float32)
    w_o = w_out.astype(jnp.bfloat16)
    b_o = b_out.reshape(1, E).astype(jnp.float32)

    g, r2, hsum, nmat, r3 = (jnp.asarray(m) for m in _structured_mats(H, D))
    HE, HH = H * E, H * H

    kernel = functools.partial(_mhca_kernel, num_heads=H)

    def const2d(shape):
        return pl.BlockSpec(shape, lambda i: (0, 0))

    out = pl.pallas_call(
        kernel,
        out_shape=jax.ShapeDtypeStruct((2, B, S, E), jnp.float32),
        grid=(B // bb,),
        in_specs=[
            pl.BlockSpec((bb, S, E), lambda i: (i, 0, 0)),
            pl.BlockSpec((bb, 1, E), lambda i: (i, 0, 0)),
            const2d((E, 2 * E)), const2d((1, 2 * E)),
            const2d((E, 2 * E)), const2d((1, 2 * E)),
            const2d((E, E)), const2d((1, E)),
            const2d((E, HE)), const2d((HE, HH)),
            const2d((HH, HH)), const2d((HH, HE)), const2d((HE, E)),
        ],
        out_specs=pl.BlockSpec((2, bb, S, E), lambda i: (0, i, 0, 0)),
        compiler_params=pltpu.CompilerParams(dimension_semantics=("parallel",)),
    )(img, text, w_it, b_it, w_ti, b_ti, w_o, b_o, g, r2, hsum, nmat, r3)

    # Wrapper-side layout plumbing: (branch, B, S, E) -> (B, 2S, E).
    return jnp.transpose(out, (1, 0, 2, 3)).reshape(B, 2 * S, E)


def mhca_reference(img, text, params, *, num_heads):
    """Pure-JAX f32 transcription of the PyTorch forward (for verification)."""
    B, S, E = img.shape
    H = num_heads
    D = E // H
    scale = 1.0 / math.sqrt(D)

    def linear(x, name):
        w, b = params[name]
        return x @ w + b

    k_it = linear(img, "img_to_text_keys").reshape(B, S, H, D)
    v_it = linear(img, "img_to_text_values").reshape(B, S, H, D)
    text_keys = jnp.tile(text, (1, S, 1)).reshape(B, S, H, D)
    k_ti = linear(text, "text_to_img_keys").reshape(B, 1, H, D)
    v_ti = linear(text, "text_to_img_values").reshape(B, 1, H, D)
    img_keys = img.reshape(B, S, H, D)

    img_att = jnp.einsum("bnqd,bnkd->bnqk", text_keys, k_it) * scale
    txt_att = jnp.einsum("bnqd,bnkd->bnqk", img_keys,
                         jnp.broadcast_to(k_ti, (B, S, H, D))) * scale
    img_att = jax.nn.softmax(img_att, axis=-1)
    txt_att = jax.nn.softmax(txt_att, axis=-1)

    img_out = jnp.einsum("bnql,bnld->bnqd", img_att, v_it).reshape(B, S, E)
    txt_out = jnp.einsum("bnql,bnld->bnqd", txt_att,
                         jnp.broadcast_to(v_ti, (B, S, H, D))).reshape(B, S, E)
    out = jnp.concatenate([img_out, txt_out], axis=1)
    w, b = params["fc_out"]
    return out @ w + b


if __name__ == "__main__":
    B, S, E, H = 2, 16, 32, 4          # batch, img seq, embed_size, num_heads

    key = jax.random.PRNGKey(0)
    k_img, k_txt, *k_params = jax.random.split(key, 2 + 10)

    img = jax.random.normal(k_img, (B, S, E), jnp.float32)
    text = jax.random.normal(k_txt, (B, 1, E), jnp.float32)

    params = {}
    names = ("img_to_text_keys", "img_to_text_values",
             "text_to_img_keys", "text_to_img_values", "fc_out")
    for idx, name in enumerate(names):
        kw, kb = k_params[2 * idx], k_params[2 * idx + 1]
        w = jax.random.normal(kw, (E, E), jnp.float32) * (1.0 / math.sqrt(E))
        b = jax.random.normal(kb, (E,), jnp.float32) * 0.02
        params[name] = (w, b)

    out = mhca_forward(img, text, params, num_heads=H)
    out = jax.block_until_ready(out)

    ref = jax.block_until_ready(mhca_reference(img, text, params, num_heads=H))
    assert out.shape == (B, 2 * S, E), out.shape
    # bf16 matmul operands + approx reciprocal vs. a pure-f32 reference.
    assert jnp.allclose(out, ref, atol=3e-2, rtol=3e-2), \
        float(jnp.max(jnp.abs(out - ref)))

    print("KERNEL_OK")
</pallas_src>

<mosaic_0001>
module attributes {stable_mosaic.version = 11 : i64} {
  func.func @_mhca_kernel(%arg0: i32, %arg1: memref<2x16x32xf32, #tpu.memory_space<vmem>>, %arg2: memref<2x1x32xf32, #tpu.memory_space<vmem>>, %arg3: memref<32x64xbf16, #tpu.memory_space<vmem>>, %arg4: memref<1x64xf32, #tpu.memory_space<vmem>>, %arg5: memref<32x64xbf16, #tpu.memory_space<vmem>>, %arg6: memref<1x64xf32, #tpu.memory_space<vmem>>, %arg7: memref<32x32xbf16, #tpu.memory_space<vmem>>, %arg8: memref<1x32xf32, #tpu.memory_space<vmem>>, %arg9: memref<32x128xf32, #tpu.memory_space<vmem>>, %arg10: memref<128x16xf32, #tpu.memory_space<vmem>>, %arg11: memref<16x16xf32, #tpu.memory_space<vmem>>, %arg12: memref<16x128xf32, #tpu.memory_space<vmem>>, %arg13: memref<128x32xf32, #tpu.memory_space<vmem>>, %arg14: memref<2x2x16x32xf32, #tpu.memory_space<vmem>>) attributes {dimension_semantics = [#tpu.dimension_semantics<parallel>], iteration_bounds = array<i64: 1>, scalar_prefetch = 0 : i64, scratch_operands = 0 : i64, tpu.core_type = #tpu.core_type<tc>, window_params = [{transform_indices = @transform_0, window_bounds = array<i64: 2, 16, 32>}, {transform_indices = @transform_1, window_bounds = array<i64: 2, 1, 32>}, {pipeline_mode = #tpu.pipeline_mode<synchronous>, transform_indices = @transform_2, window_bounds = array<i64: 32, 64>}, {pipeline_mode = #tpu.pipeline_mode<synchronous>, transform_indices = @transform_3, window_bounds = array<i64: 1, 64>}, {pipeline_mode = #tpu.pipeline_mode<synchronous>, transform_indices = @transform_4, window_bounds = array<i64: 32, 64>}, {pipeline_mode = #tpu.pipeline_mode<synchronous>, transform_indices = @transform_5, window_bounds = array<i64: 1, 64>}, {pipeline_mode = #tpu.pipeline_mode<synchronous>, transform_indices = @transform_6, window_bounds = array<i64: 32, 32>}, {pipeline_mode = #tpu.pipeline_mode<synchronous>, transform_indices = @transform_7, window_bounds = array<i64: 1, 32>}, {pipeline_mode = #tpu.pipeline_mode<synchronous>, transform_indices = @transform_8, window_bounds = array<i64: 32, 128>}, {pipeline_mode = #tpu.pipeline_mode<synchronous>, transform_indices = @transform_9, window_bounds = array<i64: 128, 16>}, {pipeline_mode = #tpu.pipeline_mode<synchronous>, transform_indices = @transform_10, window_bounds = array<i64: 16, 16>}, {pipeline_mode = #tpu.pipeline_mode<synchronous>, transform_indices = @transform_11, window_bounds = array<i64: 16, 128>}, {pipeline_mode = #tpu.pipeline_mode<synchronous>, transform_indices = @transform_12, window_bounds = array<i64: 128, 32>}, {transform_indices = @transform_13, window_bounds = array<i64: 2, 2, 16, 32>}]} {
    %c0 = arith.constant 0 : index
    %c0_0 = arith.constant 0 : index
    %c0_1 = arith.constant 0 : index
    %0 = vector.load %arg1[%c0, %c0_0, %c0_1] : memref<2x16x32xf32, #tpu.memory_space<vmem>>, vector<2x16x32xf32>
    %c0_2 = arith.constant 0 : index
    %c0_3 = arith.constant 0 : index
    %c0_4 = arith.constant 0 : index
    %1 = vector.load %arg2[%c0_2, %c0_3, %c0_4] : memref<2x1x32xf32, #tpu.memory_space<vmem>>, vector<2x1x32xf32>
    %2 = vector.shape_cast %1 : vector<2x1x32xf32> to vector<2x32xf32>
    %3 = vector.shape_cast %0 : vector<2x16x32xf32> to vector<32x32xf32>
    %4 = arith.truncf %3 : vector<32x32xf32> to vector<32x32xbf16>
    %c0_5 = arith.constant 0 : index
    %c0_6 = arith.constant 0 : index
    %5 = vector.load %arg3[%c0_5, %c0_6] : memref<32x64xbf16, #tpu.memory_space<vmem>>, vector<32x64xbf16>
    %cst = arith.constant dense<0.000000e+00> : vector<32x64xf32>
    %6 = tpu.matmul %4, %5, %cst {dimension_numbers = #tpu.dot_dimension_numbers<[1], [0], [0], [1], [0, 0, 1, 1], [], []>} : vector<32x32xbf16>, vector<32x64xbf16>, vector<32x64xf32> -> vector<32x64xf32>
    %c0_7 = arith.constant 0 : index
    %c0_8 = arith.constant 0 : index
    %7 = vector.load %arg4[%c0_7, %c0_8] : memref<1x64xf32, #tpu.memory_space<vmem>>, vector<1x64xf32>
    %8 = vector.broadcast %7 : vector<1x64xf32> to vector<32x64xf32>
    %9 = arith.addf %6, %8 : vector<32x64xf32>
    %10 = arith.truncf %2 : vector<2x32xf32> to vector<2x32xbf16>
    %c0_9 = arith.constant 0 : index
    %c0_10 = arith.constant 0 : index
    %11 = vector.load %arg5[%c0_9, %c0_10] : memref<32x64xbf16, #tpu.memory_space<vmem>>, vector<32x64xbf16>
    %cst_11 = arith.constant dense<0.000000e+00> : vector<2x64xf32>
    %12 = tpu.matmul %10, %11, %cst_11 {dimension_numbers = #tpu.dot_dimension_numbers<[1], [0], [0], [1], [0, 0, 1, 1], [], []>} : vector<2x32xbf16>, vector<32x64xbf16>, vector<2x64xf32> -> vector<2x64xf32>
    %c0_12 = arith.constant 0 : index
    %c0_13 = arith.constant 0 : index
    %13 = vector.load %arg6[%c0_12, %c0_13] : memref<1x64xf32, #tpu.memory_space<vmem>>, vector<1x64xf32>
    %14 = vector.broadcast %13 : vector<1x64xf32> to vector<2x64xf32>
    %15 = arith.addf %12, %14 : vector<2x64xf32>
    %16 = vector.shape_cast %2 : vector<2x32xf32> to vector<2x1x32xf32>
    %17 = vector.shape_cast %16 : vector<2x1x32xf32> to vector<2x1x32xf32>
    %18 = vector.broadcast %17 : vector<2x1x32xf32> to vector<2x16x32xf32>
    %19 = vector.shape_cast %18 : vector<2x16x32xf32> to vector<32x32xf32>
    %20 = vector.shape_cast %15 : vector<2x64xf32> to vector<2x1x64xf32>
    %21 = vector.shape_cast %20 : vector<2x1x64xf32> to vector<2x1x64xf32>
    %22 = vector.broadcast %21 : vector<2x1x64xf32> to vector<2x16x64xf32>
    %23 = vector.shape_cast %22 : vector<2x16x64xf32> to vector<32x64xf32>
    %24 = tpu.concatenate %19, %3 in 0 : vector<32x32xf32>, vector<32x32xf32> -> vector<64x32xf32>
    %25 = tpu.concatenate %9, %23 in 0 : vector<32x64xf32>, vector<32x64xf32> -> vector<64x64xf32>
    %26 = vector.extract_strided_slice %25 {offsets = [0, 0], sizes = [64, 32], strides = [1, 1]} : vector<64x64xf32> to vector<64x32xf32>
    %27 = vector.extract_strided_slice %25 {offsets = [0, 32], sizes = [64, 32], strides = [1, 1]} : vector<64x64xf32> to vector<64x32xf32>
    %c0_14 = arith.constant 0 : index
    %c0_15 = arith.constant 0 : index
    %28 = vector.load %arg9[%c0_14, %c0_15] : memref<32x128xf32, #tpu.memory_space<vmem>>, vector<32x128xf32>
    %c0_16 = arith.constant 0 : index
    %c0_17 = arith.constant 0 : index
    %29 = vector.load %arg10[%c0_16, %c0_17] : memref<128x16xf32, #tpu.memory_space<vmem>>, vector<128x16xf32>
    %c0_18 = arith.constant 0 : index
    %c0_19 = arith.constant 0 : index
    %30 = vector.load %arg11[%c0_18, %c0_19] : memref<16x16xf32, #tpu.memory_space<vmem>>, vector<16x16xf32>
    %c0_20 = arith.constant 0 : index
    %c0_21 = arith.constant 0 : index
    %31 = vector.load %arg12[%c0_20, %c0_21] : memref<16x128xf32, #tpu.memory_space<vmem>>, vector<16x128xf32>
    %c0_22 = arith.constant 0 : index
    %c0_23 = arith.constant 0 : index
    %32 = vector.load %arg13[%c0_22, %c0_23] : memref<128x32xf32, #tpu.memory_space<vmem>>, vector<128x32xf32>
    %cst_24 = arith.constant dense<0.000000e+00> : vector<64x128xf32>
    %33 = tpu.matmul %24, %28, %cst_24 {dimension_numbers = #tpu.dot_dimension_numbers<[1], [0], [0], [1], [0, 0, 1, 1], [], []>} : vector<64x32xf32>, vector<32x128xf32>, vector<64x128xf32> -> vector<64x128xf32>
    %34 = tpu.concatenate %26, %26, %26, %26 in 1 : vector<64x32xf32>, vector<64x32xf32>, vector<64x32xf32>, vector<64x32xf32> -> vector<64x128xf32>
    %35 = arith.mulf %33, %34 : vector<64x128xf32>
    %cst_25 = arith.constant dense<0.000000e+00> : vector<64x16xf32>
    %36 = tpu.matmul %35, %29, %cst_25 {dimension_numbers = #tpu.dot_dimension_numbers<[1], [0], [0], [1], [0, 0, 1, 1], [], []>} : vector<64x128xf32>, vector<128x16xf32>, vector<64x16xf32> -> vector<64x16xf32>
    %cst_26 = arith.constant dense<0xFF800000> : vector<64xf32>
    %37 = vector.multi_reduction <maximumf>, %36, %cst_26 [1] : vector<64x16xf32> to vector<64xf32>
    %38 = vector.shape_cast %37 : vector<64xf32> to vector<64x1xf32>
    %39 = vector.broadcast %38 : vector<64x1xf32> to vector<64x16xf32>
    %40 = arith.subf %36, %39 : vector<64x16xf32>
    %41 = math.exp %40 : vector<64x16xf32>
    %cst_27 = arith.constant dense<0.000000e+00> : vector<64x16xf32>
    %42 = tpu.matmul %41, %30, %cst_27 {dimension_numbers = #tpu.dot_dimension_numbers<[1], [0], [0], [1], [0, 0, 1, 1], [], []>} : vector<64x16xf32>, vector<16x16xf32>, vector<64x16xf32> -> vector<64x16xf32>
    %43 = tpu.reciprocal %42 {approx = true} : vector<64x16xf32> -> vector<64x16xf32>
    %44 = arith.mulf %41, %43 : vector<64x16xf32>
    %cst_28 = arith.constant dense<0.000000e+00> : vector<64x128xf32>
    %45 = tpu.matmul %44, %31, %cst_28 {dimension_numbers = #tpu.dot_dimension_numbers<[1], [0], [0], [1], [0, 0, 1, 1], [], []>} : vector<64x16xf32>, vector<16x128xf32>, vector<64x128xf32> -> vector<64x128xf32>
    %46 = tpu.concatenate %27, %27, %27, %27 in 1 : vector<64x32xf32>, vector<64x32xf32>, vector<64x32xf32>, vector<64x32xf32> -> vector<64x128xf32>
    %47 = arith.mulf %45, %46 : vector<64x128xf32>
    %cst_29 = arith.constant dense<0.000000e+00> : vector<64x32xf32>
    %48 = tpu.matmul %47, %32, %cst_29 {dimension_numbers = #tpu.dot_dimension_numbers<[1], [0], [0], [1], [0, 0, 1, 1], [], []>} : vector<64x128xf32>, vector<128x32xf32>, vector<64x32xf32> -> vector<64x32xf32>
    %49 = arith.truncf %48 : vector<64x32xf32> to vector<64x32xbf16>
    %c0_30 = arith.constant 0 : index
    %c0_31 = arith.constant 0 : index
    %50 = vector.load %arg7[%c0_30, %c0_31] : memref<32x32xbf16, #tpu.memory_space<vmem>>, vector<32x32xbf16>
    %cst_32 = arith.constant dense<0.000000e+00> : vector<64x32xf32>
    %51 = tpu.matmul %49, %50, %cst_32 {dimension_numbers = #tpu.dot_dimension_numbers<[1], [0], [0], [1], [0, 0, 1, 1], [], []>} : vector<64x32xbf16>, vector<32x32xbf16>, vector<64x32xf32> -> vector<64x32xf32>
    %c0_33 = arith.constant 0 : index
    %c0_34 = arith.constant 0 : index
    %52 = vector.load %arg8[%c0_33, %c0_34] : memref<1x32xf32, #tpu.memory_space<vmem>>, vector<1x32xf32>
    %53 = vector.broadcast %52 : vector<1x32xf32> to vector<64x32xf32>
    %54 = arith.addf %51, %53 : vector<64x32xf32>
    %55 = vector.shape_cast %54 : vector<64x32xf32> to vector<2x2x16x32xf32>
    %c0_35 = arith.constant 0 : index
    %c0_36 = arith.constant 0 : index
    %c0_37 = arith.constant 0 : index
    %c0_38 = arith.constant 0 : index
    %56 = vector.load %arg14[%c0_35, %c0_36, %c0_37, %c0_38] : memref<2x2x16x32xf32, #tpu.memory_space<vmem>>, vector<2x2x16x32xf32>
    tpu.vector_store %arg14[%c0_35, %c0_36, %c0_37, %c0_38], %55 {strides = array<i32>} : memref<2x2x16x32xf32, #tpu.memory_space<vmem>>, vector<2x2x16x32xf32>,
    return
  }
  func.func @transform_0(%arg0: i32) -> (i32, i32, i32) {
    %c0_i32 = arith.constant 0 : i32
    %c0_i32_0 = arith.constant 0 : i32
    %c0_i32_1 = arith.constant 0 : i32
    return %arg0, %c0_i32, %c0_i32_0 : i32, i32, i32
  }
  func.func @transform_1(%arg0: i32) -> (i32, i32, i32) {
    %c0_i32 = arith.constant 0 : i32
    %c0_i32_0 = arith.constant 0 : i32
    %c0_i32_1 = arith.constant 0 : i32
    return %arg0, %c0_i32, %c0_i32_0 : i32, i32, i32
  }
  func.func @transform_2(%arg0: i32) -> (i32, i32) {
    %c0_i32 = arith.constant 0 : i32
    %c0_i32_0 = arith.constant 0 : i32
    %c0_i32_1 = arith.constant 0 : i32
    return %c0_i32, %c0_i32_0 : i32, i32
  }
  func.func @transform_3(%arg0: i32) -> (i32, i32) {
    %c0_i32 = arith.constant 0 : i32
    %c0_i32_0 = arith.constant 0 : i32
    %c0_i32_1 = arith.constant 0 : i32
    return %c0_i32, %c0_i32_0 : i32, i32
  }
  func.func @transform_4(%arg0: i32) -> (i32, i32) {
    %c0_i32 = arith.constant 0 : i32
    %c0_i32_0 = arith.constant 0 : i32
    %c0_i32_1 = arith.constant 0 : i32
    return %c0_i32, %c0_i32_0 : i32, i32
  }
  func.func @transform_5(%arg0: i32) -> (i32, i32) {
    %c0_i32 = arith.constant 0 : i32
    %c0_i32_0 = arith.constant 0 : i32
    %c0_i32_1 = arith.constant 0 : i32
    return %c0_i32, %c0_i32_0 : i32, i32
  }
  func.func @transform_6(%arg0: i32) -> (i32, i32) {
    %c0_i32 = arith.constant 0 : i32
    %c0_i32_0 = arith.constant 0 : i32
    %c0_i32_1 = arith.constant 0 : i32
    return %c0_i32, %c0_i32_0 : i32, i32
  }
  func.func @transform_7(%arg0: i32) -> (i32, i32) {
    %c0_i32 = arith.constant 0 : i32
    %c0_i32_0 = arith.constant 0 : i32
    %c0_i32_1 = arith.constant 0 : i32
    return %c0_i32, %c0_i32_0 : i32, i32
  }
  func.func @transform_8(%arg0: i32) -> (i32, i32) {
    %c0_i32 = arith.constant 0 : i32
    %c0_i32_0 = arith.constant 0 : i32
    %c0_i32_1 = arith.constant 0 : i32
    return %c0_i32, %c0_i32_0 : i32, i32
  }
  func.func @transform_9(%arg0: i32) -> (i32, i32) {
    %c0_i32 = arith.constant 0 : i32
    %c0_i32_0 = arith.constant 0 : i32
    %c0_i32_1 = arith.constant 0 : i32
    return %c0_i32, %c0_i32_0 : i32, i32
  }
  func.func @transform_10(%arg0: i32) -> (i32, i32) {
    %c0_i32 = arith.constant 0 : i32
    %c0_i32_0 = arith.constant 0 : i32
    %c0_i32_1 = arith.constant 0 : i32
    return %c0_i32, %c0_i32_0 : i32, i32
  }
  func.func @transform_11(%arg0: i32) -> (i32, i32) {
    %c0_i32 = arith.constant 0 : i32
    %c0_i32_0 = arith.constant 0 : i32
    %c0_i32_1 = arith.constant 0 : i32
    return %c0_i32, %c0_i32_0 : i32, i32
  }
  func.func @transform_12(%arg0: i32) -> (i32, i32) {
    %c0_i32 = arith.constant 0 : i32
    %c0_i32_0 = arith.constant 0 : i32
    %c0_i32_1 = arith.constant 0 : i32
    return %c0_i32, %c0_i32_0 : i32, i32
  }
  func.func @transform_13(%arg0: i32) -> (i32, i32, i32, i32) {
    %c0_i32 = arith.constant 0 : i32
    %c0_i32_0 = arith.constant 0 : i32
    %c0_i32_1 = arith.constant 0 : i32
    %c0_i32_2 = arith.constant 0 : i32
    return %c0_i32, %arg0, %c0_i32_0, %c0_i32_1 : i32, i32, i32, i32
  }
}

</mosaic_0001>

<bundles_post_ra>
// kernel: tpu_custom_call.1
= control target key start
LH: loop header
LB: loop body
LE: loop exit
PB: predicated region body
PF: predicated region fallthrough
CT: control target
= control target key end

     0   :  { %v211_v1 = vlaneseq  ;;  %vm77_vm0 = vcmask 261120   ;;  %v1556_v6 = vmov 0.0   ;;  %vm1557_vm1 = vmmov 0   ;;  %s2001_s0 = inlined_call_operand.vmem [shape: f32[2,16,32], index: 0, kind: input, shape index: {}]   ;;  %s2002_s1 = inlined_call_operand.vmem [shape: f32[2,1,32], index: 1, kind: input, shape index: {}]   ;;  %s2003_s2 = inlined_call_operand.vmem [shape: bf16[32,64], index: 2, kind: input, shape index: {}]   ;;  %s2004_s3 = inlined_call_operand.vmem [shape: f32[1,64], index: 3, kind: input, shape index: {}]   ;;  %s2005_s4 = inlined_call_operand.vmem [shape: bf16[32,64], index: 4, kind: input, shape index: {}]   ;;  %s2006_s5 = inlined_call_operand.vmem [shape: f32[1,64], index: 5, kind: input, shape index: {}]   ;;  %s2007_s6 = inlined_call_operand.vmem [shape: bf16[32,32], index: 6, kind: input, shape index: {}]   ;;  %s2008_s7 = inlined_call_operand.vmem [shape: f32[1,32], index: 7, kind: input, shape index: {}]   ;;  %s2009_s8 = inlined_call_operand.vmem [shape: f32[32,128], index: 8, kind: input, shape index: {}]   ;;  %s2010_s9 = inlined_call_operand.vmem [shape: f32[128,16], index: 9, kind: input, shape index: {}]   ;;  %s2011_s10 = inlined_call_operand.vmem [shape: f32[16,16], index: 10, kind: input, shape index: {}]   ;;  %s2012_s11 = inlined_call_operand.vmem [shape: f32[16,128], index: 11, kind: input, shape index: {}]   ;;  %s2013_s12 = inlined_call_operand.vmem [shape: f32[128,32], index: 12, kind: input, shape index: {}]   ;;  %s2014_s13 = inlined_call_operand.hbm [shape: f32[2,2,16,32], index: 13, kind: output, shape index: {}]  }
   0x1   :  { %v1496_v0 = vld [vmem:[%s2003_s2 + $0x8] sm:$0xff]   ;;  %v1497_v2 = vld [vmem:[%s2003_s2] sm:$0xff]   ;;  %v48_v5 = vld [vmem:[%s2001_s0 + $0x10] sm:$0xff]  ;;  %1327 = vmatprep.subr.bf16.mxu1 %v1556_v6  ;;  %1331 = vmatprep.mubr.msk.bf16.mxu1 %vm1557_vm1, %v1556_v6 }
   0x2   :  { %1319 = vmatprep.subr.bf16.mxu0 %v1496_v0  ;;  %v46_v3 = vld [vmem:[%s2001_s0] sm:$0xff]  ;;  %v47_v4 = vld [vmem:[%s2001_s0 + $0x8] sm:$0xff]  ;;  %v1650_v7 = vshrl.u32 %v211_v1, 7  ;;  %v49_v9 = vld [vmem:[%s2001_s0 + $0x18] sm:$0xff] }
   0x3   :  { %1320 = vmatpush3.bf16.msra.mxu0 %v1496_v0  ;;  %v52_v8 = vpack.c.bf16 %v47_v4, %v46_v3  ;;  %v1498_v10 = vld [vmem:[%s2005_s4 + $0x8] sm:$0xff]   ;;  %v50_v12 = vld [vmem:[%s2002_s1] sm:$0x1]  ;;  %v51_v13 = vld [vmem:[%s2002_s1 + $0x1] sm:$0x1]  ;;  %v53_v14 = vpack.c.bf16 %v49_v9, %v48_v5 }
   0x4   :  { %1321 = vmatprep.subr.bf16.mxu0 %v1497_v2  ;;  %v1659_v11 = vsub.s32 0, %v1650_v7  ;;  %1328 = vmatpush3.bf16.msra.mxu1 %v1498_v10  ;;  %v1499_v15 = vld [vmem:[%s2005_s4] sm:$0xff]   ;;  %v133_v16 = vpack.c.bf16 %v50_v12, %v50_v12  ;;  %v134_v17 = vpack.c.bf16 %v51_v13, %v51_v13  ;;  %v255_v18 = vld [vmem:[%s2009_s8 + $0x18] sm:$0xff] }
   0x5   :  { %1323 = vmatprep.mubr.msk.bf16.mxu0 %vm77_vm0, %v52_v8  ;;  %1329 = vmatprep.subr.bf16.mxu1 %v1556_v6 }
   0x6   :  { %v214_v19 = vrot.slane %v50_v12, %v1659_v11  ;;  %v148_v20 = vunpack.c.l.b16 %v133_v16  ;;  %v149_v21 = vunpack.c.l.b16 %v134_v17 }
   0x7   :  { %1322 = vmatpush3.bf16.msra.mxu0 %v1497_v2 }
   0x8   :  { %1335 = vmatprep.subr.mxu0 %v255_v18 }
   0x9   :  { %18 = vsyncpa [#allocation3], 0  ;;  %vm151_vm2 = vcmask 1041409   ;;  %v254_v22 = vld [vmem:[%s2009_s8 + $0x10] sm:$0xff]  ;;  %1330 = vmatpush3.bf16.msra.mxu1 %v1499_v15  ;;  %v150_v23 = vrot.slane %v149_v21, 7  ;;  %v253_v24 = vld [vmem:[%s2009_s8 + $0x8] sm:$0xff]  ;;  %v218_v28 = vrot.slane %v51_v13, %v1659_v11 }
   0xa   :  { %1324 = vmatmul.mubr.msk.bf16.vlgmr.msra.gmra.mxu0 %vm77_vm0, %v53_v14  ;;  %v252_v27 = vld [vmem:[%s2009_s8] sm:$0xff]  ;;  %v271_v29 = vld [vmem:[%s2010_s9 + $0x78] sm:$0xff]  ;;  %v270_v30 = vld [vmem:[%s2010_s9 + $0x70] sm:$0xff]  ;;  %v1559_v45 = vmov 1966171168   ;;  %s1560_s2 = smov 64  }
   0xb   :  { %1336 = vmatpush3.msra.mxu0 %v255_v18  ;;  %1343 = vmatprep.mubr.msk.f32.mxu0 %vm77_vm0, %v214_v19  ;;  %v152_v25 = vsel %vm151_vm2, %v150_v23, %v148_v20  ;;  %v269_v31 = vld [vmem:[%s2010_s9 + $0x68] sm:$0xff]  ;;  %v268_v32 = vld [vmem:[%s2010_s9 + $0x60] sm:$0xff]  ;;  %v267_v33 = vld [vmem:[%s2010_s9 + $0x58] sm:$0xff]  ;;  %v221_v46 = vunpack.c.l.s4 %v1559_v45  ;;  %s1561_s25 = smov 96   ;;  %vm477_vm3 = vcmask 523264   ;;  %vm484_vm4 = vcmask 785408  }
   0xc   :  { %1337 = vmatprep.subr.mxu0 %v254_v22  ;;  %v153_v26 = vpack.c.b16 %v152_v25, %v152_v25  ;;  %1355 = vmatprep.subr.mxu1 %v271_v29  ;;  %v266_v34 = vld [vmem:[%s2010_s9 + $0x50] sm:$0xff]  ;;  %v265_v35 = vld [vmem:[%s2010_s9 + $0x48] sm:$0xff]  ;;  %v264_v36 = vld [vmem:[%s2010_s9 + $0x40] sm:$0xff]  ;;  %vm604_vm5 = vcmask 130048  }
   0xd   :  { %1338 = vmatpush3.msra.mxu0 %v254_v22  ;;  %v1186_v37 = vld [vmem:[%s2004_s3] ss:$0 sm:$0xff]  ;;  %v263_v38 = vld [vmem:[%s2010_s9 + $0x38] sm:$0xff]  ;;  %v262_v40 = vld [vmem:[%s2010_s9 + $0x30] sm:$0xff]  ;;  %s1558_s3 = smov 32   ;;  %v222_v52 = vunpack.c.0.s8 %v221_v46 }
   0xe   :  { %1339 = vmatprep.subr.mxu0 %v253_v24  ;;  %1332 = vmatmul.mubr.msk.bf16.vlgmr.msra.gmra.mxu1 %vm77_vm0, %v153_v26  ;;  %v261_v43 = vld [vmem:[%s2010_s9 + $0x28] sm:$0xff]  ;;  %v260_v48 = vld [vmem:[%s2010_s9 + $0x20] sm:$0xff]  ;;  %v259_v50 = vld [vmem:[%s2010_s9 + $0x18] sm:$0xff] }
   0xf   :  { %1340 = vmatpush3.msra.mxu0 %v253_v24  ;;  %1356 = vmatpush3.msra.mxu1 %v271_v29  ;;  %v258_v54 = vld [vmem:[%s2010_s9 + $0x10] sm:$0xff]  ;;  %v1191_v55 = vld [vmem:[%s2006_s5] ss:$0 sm:$0xff]  ;;  %v257_v57 = vld [vmem:[%s2010_s9 + $0x8] sm:$0xff]  ;;  %v225_v59 = vsub.s32 %v222_v52, %v1650_v7 }
  0x10   :  { %1341 = vmatprep.subr.mxu0 %v252_v27  ;;  %1357 = vmatprep.subr.mxu1 %v270_v30  ;;  %v256_v61 = vld [vmem:[%s2010_s9] sm:$0xff] }
  0x11   :  { %1342 = vmatpush3.msra.mxu0 %v252_v27  ;;  %1358 = vmatpush3.msra.mxu1 %v270_v30 }
  0x12   :  { %1344 = vmatmul.mubr.msk.f32.vlgmr.msra.gmra.mxu0 %vm77_vm0, %v214_v19  ;;  %1359 = vmatprep.subr.mxu1 %v269_v31 }
  0x13   :  { %1346 = vmatprep.mubr.msk.f32.mxu0 %vm77_vm0, %v218_v28  ;;  %1360 = vmatpush3.msra.mxu1 %v269_v31 }
  0x14   :  { %1361 = vmatprep.subr.mxu1 %v268_v32 }
  0x15   :  { %1362 = vmatpush3.msra.mxu1 %v268_v32 }
  0x16   :  { %1347 = vmatmul.mubr.msk.f32.gmra.mxu0 %vm77_vm0, %v218_v28  ;;  %1363 = vmatprep.subr.mxu1 %v267_v33 }
  0x17   :  { %1349 = vmatprep.mubr.msk.f32.mxu0 %vm77_vm0, %v46_v3  ;;  %1364 = vmatpush3.msra.mxu1 %v267_v33 }
  0x18   :  { %1365 = vmatprep.subr.mxu1 %v266_v34 }
  0x19   :  { %1366 = vmatpush3.msra.mxu1 %v266_v34 }
  0x1a   :  { %1350 = vmatmul.mubr.msk.f32.gmra.mxu0 %vm77_vm0, %v47_v4  ;;  %1367 = vmatprep.subr.mxu1 %v265_v35 }
  0x1b   :  { %1352 = vmatprep.mubr.msk.f32.mxu0 %vm77_vm0, %v48_v5  ;;  %1368 = vmatpush3.msra.mxu1 %v265_v35 }
  0x1c   :  { %1369 = vmatprep.subr.mxu1 %v264_v36 }
  0x1d   :  { %1370 = vmatpush3.msra.mxu1 %v264_v36 }
  0x1e   :  { %1353 = vmatmul.mubr.msk.f32.gmra.mxu0 %vm77_vm0, %v49_v9  ;;  %1371 = vmatprep.subr.mxu1 %v263_v38 }
  0x1f   :  { %1372 = vmatpush3.msra.mxu1 %v263_v38 }
  0x20   :  { %1373 = vmatprep.subr.mxu1 %v262_v40 }
  0x21   :  { %1374 = vmatpush3.msra.mxu1 %v262_v40 }
  0x22   :  { %1375 = vmatprep.subr.mxu1 %v261_v43 }
  0x23   :  { %1376 = vmatpush3.msra.mxu1 %v261_v43 }
  0x24   :  { %1377 = vmatprep.subr.mxu1 %v260_v48 }
  0x25   :  { %1378 = vmatpush3.msra.mxu1 %v260_v48 }
  0x26   :  { %1379 = vmatprep.subr.mxu1 %v259_v50 }
  0x27   :  { %1380 = vmatpush3.msra.mxu1 %v259_v50 }
  0x28   :  { %1381 = vmatprep.subr.mxu1 %v258_v54 }
  0x29   :  { %1382 = vmatpush3.msra.mxu1 %v258_v54 }
  0x2a   :  { %1383 = vmatprep.subr.mxu1 %v257_v57 }
  0x2b   :  { %1384 = vmatpush3.msra.mxu1 %v257_v57 }
  0x2c   :  { %1385 = vmatprep.subr.mxu1 %v256_v61 }
  0x2d   :  { %1386 = vmatpush3.msra.mxu1 %v256_v61 }
  0xca   :  { %v1325_v39 = vpop.f32.mrf.mxu0 }
  0xcb   :  { %v1728_v41 = vadd.f32 %v1325_v39, %v1186_v37 }
  0xcc   :  { %v118_v42 = vpop.f32.mrf.mxu0 }
  0xcd   :  { %v1733_v44 = vadd.f32 %v1186_v37, %v118_v42  ;;  %421 = vrot.lane.b32.xlu0 %v1728_v41, %s1558_s3 }
  0xce   :  { %v1326_v47 = vpop.f32.mrf.mxu0  ;;  %v203_v49 = vpop.f32.mrf.mxu1 }
  0xcf   :  { %435 = vrot.lane.b32.xlu1 %v1733_v44, %s1560_s2  ;;  %v1745_v51 = vadd.f32 %v1326_v47, %v1186_v37  ;;  %v204_v58 = vadd.f32 %v1191_v55, %v203_v49 }
  0xd0   :  { %v1333_v53 = vpop.f32.mrf.mxu1  ;;  %v121_v63 = vpop.f32.mrf.mxu0 }
  0xd1   :  { %439 = vrot.lane.b32.xlu0 %v1728_v41, %s1560_s2  ;;  %v226_v62 = vrot.slane %v204_v58, %v225_v59  ;;  %v122_v0 = vadd.f32 %v1186_v37, %v121_v63 }
  0xd2   :  { %v206_v56 = vpop.f32.mrf.mxu1 }
  0xd3   :  { %423 = vrot.lane.b32.xlu1 %v1745_v51, %s1558_s3  ;;  %v234_v1 = vrot.slane %v226_v62, %v225_v59  ;;  %v227_v2 = vcombine.high %v226_v62, %v226_v62 }
  0xd4   :  { %v1334_v60 = vpop.f32.mrf.mxu1 }
  0xd5   :  { %457 = vrot.lane.b32.xlu0 %v1728_v41, %s1561_s25  ;;  %v1776_v3 = vrot.slane %v234_v1, %v1659_v11  ;;  %v241_v4 = vrot.slane %v227_v2, %v225_v59 }
  0xd7   :  { %441 = vrot.lane.b32.xlu1 %v1745_v51, %s1560_s2  ;;  %v1783_v5 = vrot.slane %v241_v4, %v1659_v11  ;;  %v1345_v11 = vpop.f32.mrf.mxu0 }
  0xd9   :  { %417 = vrot.lane.b32.xlu0 %v1733_v44, %s1558_s3  ;;  %v374_v17 = vpop.f32.mrf.mxu0 }
  0xdb   :  { %459 = vrot.lane.b32.xlu1 %v1745_v51, %s1561_s25  ;;  %v1348_v24 = vpop.f32.mrf.mxu0 }
  0xdd   :  { %453 = vrot.lane.b32.xlu0 %v1733_v44, %s1561_s25  ;;  %v384_v35 = vpop.f32.mrf.mxu0 }
  0xdf   :  { %437 = vrot.lane.b32.xlu1 %v122_v0, %s1560_s2 }
  0xe1   :  { %419 = vrot.lane.b32.xlu0 %v122_v0, %s1558_s3 }
  0xe3   :  { %455 = vrot.lane.b32.xlu1 %v122_v0, %s1561_s25 }
  0xe5   :  { %425 = vrot.lane.b32.xlu0 %v1776_v3, %s1558_s3 }
  0xe7   :  { %443 = vrot.lane.b32.xlu1 %v1776_v3, %s1560_s2 }
  0xe9   :  { %461 = vrot.lane.b32.xlu0 %v1776_v3, %s1561_s25 }
  0xeb   :  { %427 = vrot.lane.b32.xlu1 %v1783_v5, %s1558_s3 }
  0xed   :  { %445 = vrot.lane.b32.xlu0 %v1783_v5, %s1560_s2 }
  0xef   :  { %463 = vrot.lane.b32.xlu1 %v1783_v5, %s1561_s25 }
 0x13f   :  { %v422_v6 = vpop.permute.xlu0 %421 }
 0x140   :  { %v473_v32 = vsel %vm77_vm0, %v1728_v41, %v422_v6 }
 0x141   :  { %v436_v7 = vpop.permute.xlu1 %435 }
 0x143   :  { %v440_v8 = vpop.permute.xlu0 %439 }
 0x144   :  { %v480_v34 = vsel %vm477_vm3, %v473_v32, %v440_v8  ;;  %v272_v32 = vld [vmem:[%s2011_s10] sm:$0xff] }
 0x145   :  { %v424_v9 = vpop.permute.xlu1 %423 }
 0x146   :  { %v474_v40 = vsel %vm77_vm0, %v1745_v51, %v424_v9 }
 0x147   :  { %v458_v10 = vpop.permute.xlu0 %457 }
 0x148   :  { %v929_v12 = vsel %vm77_vm0, %v458_v10, %v1728_v41  ;;  %v487_v37 = vsel %vm484_vm4, %v480_v34, %v458_v10  ;;  %v1351_v41 = vpop.f32.mrf.mxu0 }
 0x149   :  { %v442_v13 = vpop.permute.xlu1 %441  ;;  %v935_v14 = vsel %vm477_vm3, %v929_v12, %v422_v6  ;;  %v493_v48 = vmul.f32 %v487_v37, %v384_v35 }
 0x14a   :  { %v1799_v15 = vsel %vm484_vm4, %v935_v14, %v440_v8  ;;  %v394_v54 = vpop.f32.mrf.mxu0 }
 0x14b   :  { %v418_v16 = vpop.permute.xlu0 %417 }
 0x14c   :  { %v471_v18 = vsel %vm77_vm0, %v1733_v44, %v418_v16  ;;  %v1354_v59 = vpop.f32.mrf.mxu0 }
 0x14d   :  { %v460_v19 = vpop.permute.xlu1 %459  ;;  %v478_v21 = vsel %vm477_vm3, %v471_v18, %v436_v7 }
 0x14e   :  { %v930_v20 = vsel %vm77_vm0, %v460_v19, %v1745_v51 }
 0x14f   :  { %v454_v22 = vpop.permute.xlu0 %453  ;;  %v936_v23 = vsel %vm477_vm3, %v930_v20, %v424_v9 }
 0x150   :  { %v485_v25 = vsel %vm484_vm4, %v478_v21, %v454_v22  ;;  %v927_v26 = vsel %vm77_vm0, %v454_v22, %v1733_v44  ;;  %v1811_v27 = vsel %vm484_vm4, %v936_v23, %v442_v13  ;;  %v481_v44 = vsel %vm477_vm3, %v474_v40, %v442_v13 }
 0x151   :  { %v491_v28 = vmul.f32 %v485_v25, %v374_v17  ;;  %v438_v29 = vpop.permute.xlu1 %437  ;;  %v933_v30 = vsel %vm477_vm3, %v927_v26, %v418_v16  ;;  %v488_v49 = vsel %vm484_vm4, %v481_v44, %v460_v19 }
 0x152   :  { %v1815_v31 = vsel %vm484_vm4, %v933_v30, %v436_v7  ;;  %v494_v55 = vmul.f32 %v1348_v24, %v488_v49  ;;  %v273_v30 = vld [vmem:[%s2011_s10 + $0x8] sm:$0xff] }
 0x153   :  { %1387 = vmatprep.mubr.f32.mxu1 %v491_v28  ;;  %v420_v33 = vpop.permute.xlu0 %419  ;;  %1399 = vmatprep.subr.mxu0 %v273_v30 }
 0x154   :  { %v472_v36 = vsel %vm77_vm0, %v122_v0, %v420_v33  ;;  %1400 = vmatpush3.msra.mxu0 %v273_v30 }
 0x155   :  { %v456_v38 = vpop.permute.xlu1 %455  ;;  %v479_v39 = vsel %vm477_vm3, %v472_v36, %v438_v29  ;;  %1401 = vmatprep.subr.mxu0 %v272_v32 }
 0x156   :  { %v486_v42 = vsel %vm484_vm4, %v479_v39, %v456_v38  ;;  %v928_v43 = vsel %vm77_vm0, %v456_v38, %v122_v0  ;;  %1402 = vmatpush3.msra.mxu0 %v272_v32 }
 0x157   :  { %v492_v45 = vmul.f32 %v1345_v11, %v486_v42  ;;  %v426_v46 = vpop.permute.xlu0 %425  ;;  %v934_v47 = vsel %vm477_vm3, %v928_v43, %v420_v33 }
 0x158   :  { %v475_v50 = vsel %vm77_vm0, %v1776_v3, %v426_v46  ;;  %v1833_v52 = vsel %vm484_vm4, %v934_v47, %v438_v29 }
 0x159   :  { %v444_v51 = vpop.permute.xlu1 %443  ;;  %1388 = vmatmul.mubr.f32.vlgmr.msra.gmra.mxu1 %v492_v45 }
 0x15a   :  { %v482_v53 = vsel %vm477_vm3, %v475_v50, %v444_v51  ;;  %1390 = vmatprep.mubr.f32.mxu1 %v493_v48 }
 0x15b   :  { %v462_v56 = vpop.permute.xlu0 %461 }
 0x15c   :  { %v931_v57 = vsel %vm77_vm0, %v462_v56, %v1776_v3  ;;  %v489_v58 = vsel %vm484_vm4, %v482_v53, %v462_v56  ;;  %v404_v3 = vpop.f32.mrf.mxu0 }
 0x15d   :  { %v495_v60 = vmul.f32 %v489_v58, %v394_v54  ;;  %v428_v61 = vpop.permute.xlu1 %427  ;;  %1391 = vmatmul.mubr.f32.gmra.mxu1 %v494_v55  ;;  %v937_v62 = vsel %vm477_vm3, %v931_v57, %v426_v46  ;;  %v496_v1 = vmul.f32 %v1351_v41, %v489_v58 }
 0x15e   :  { %v476_v63 = vsel %vm77_vm0, %v1783_v5, %v428_v61  ;;  %v1843_v0 = vsel %vm484_vm4, %v937_v62, %v444_v51 }
 0x15f   :  { %1393 = vmatprep.mubr.f32.mxu1 %v495_v60  ;;  %v446_v2 = vpop.permute.xlu0 %445 }
 0x160   :  { %v483_v4 = vsel %vm477_vm3, %v476_v63, %v446_v2 }
 0x161   :  { %v464_v6 = vpop.permute.xlu1 %463  ;;  %1394 = vmatmul.mubr.f32.gmra.mxu1 %v496_v1 }
 0x162   :  { %v932_v7 = vsel %vm77_vm0, %v464_v6, %v1783_v5  ;;  %v490_v8 = vsel %vm484_vm4, %v483_v4, %v464_v6  ;;  %v275_v4 = vld [vmem:[%s2012_s11 + $0x8] sm:$0xff]  ;;  %v291_v6 = vld [vmem:[%s2013_s12 + $0x78] sm:$0xff] }
 0x163   :  { %v497_v9 = vmul.f32 %v490_v8, %v404_v3  ;;  %v498_v10 = vmul.f32 %v1354_v59, %v490_v8  ;;  %v938_v11 = vsel %vm477_vm3, %v932_v7, %v428_v61  ;;  %v274_v3 = vld [vmem:[%s2012_s11] sm:$0xff]  ;;  %1415 = vmatprep.subr.mxu0 %v275_v4  ;;  %v290_v7 = vld [vmem:[%s2013_s12 + $0x70] sm:$0xff]  ;;  %1431 = vmatprep.subr.mxu1 %v291_v6  ;;  %v289_v8 = vld [vmem:[%s2013_s12 + $0x68] sm:$0xff] }
 0x164   :  { %v1851_v12 = vsel %vm484_vm4, %v938_v11, %v446_v2  ;;  %1432 = vmatpush3.msra.mxu1 %v291_v6  ;;  %v286_v11 = vld [vmem:[%s2013_s12 + $0x50] sm:$0xff] }
 0x165   :  { %1396 = vmatprep.mubr.f32.mxu1 %v497_v9  ;;  %1433 = vmatprep.subr.mxu1 %v290_v7  ;;  %v288_v9 = vld [vmem:[%s2013_s12 + $0x60] sm:$0xff] }
 0x166   :  { %1397 = vmatmul.mubr.f32.gmra.mxu1 %v498_v10  ;;  %v287_v10 = vld [vmem:[%s2013_s12 + $0x58] sm:$0xff] }
 0x167   :  { %1434 = vmatpush3.msra.mxu1 %v290_v7 }
 0x168   :  { %1435 = vmatprep.subr.mxu1 %v289_v8 }
 0x169   :  { %1436 = vmatpush3.msra.mxu1 %v289_v8 }
 0x16a   :  { %1437 = vmatprep.subr.mxu1 %v288_v9 }
 0x16b   :  { %1438 = vmatpush3.msra.mxu1 %v288_v9 }
 0x16c   :  { %1439 = vmatprep.subr.mxu1 %v287_v10 }
 0x16d   :  { %1440 = vmatpush3.msra.mxu1 %v287_v10 }
 0x16e   :  { %1441 = vmatprep.subr.mxu1 %v286_v11 }
 0x16f   :  { %1442 = vmatpush3.msra.mxu1 %v286_v11 }
 0x219   :  { %v1389_v13 = vpop.f32.mrf.mxu1 }
 0x21a   :  { %v608_v14 = vsel %vm604_vm5, %v1389_v13, -inf }
 0x21b   :  { %609 = vmax.xlane.f32.xlu1 %v608_v14  ;;  %v565_v16 = vpop.f32.mrf.mxu1  ;;  %v284_v14 = vld [vmem:[%s2013_s12 + $0x40] sm:$0xff] }
 0x21c   :  { %v605_v17 = vsel %vm604_vm5, %v565_v16, -inf }
 0x21d   :  { %606 = vmax.xlane.f32.xlu0 %v605_v17  ;;  %v1392_v5 = vpop.f32.mrf.mxu1  ;;  %v282_v17 = vld [vmem:[%s2013_s12 + $0x30] sm:$0xff] }
 0x21e   :  { %v614_v22 = vsel %vm604_vm5, %v1392_v5, -inf }
 0x21f   :  { %v575_v18 = vpop.f32.mrf.mxu1 }
 0x220   :  { %v611_v19 = vsel %vm604_vm5, %v575_v18, -inf }
 0x221   :  { %612 = vmax.xlane.f32.xlu0 %v611_v19  ;;  %v1395_v20 = vpop.f32.mrf.mxu1  ;;  %v279_v19 = vld [vmem:[%s2013_s12 + $0x18] sm:$0xff] }
 0x222   :  { %v620_v26 = vsel %vm604_vm5, %v1395_v20, -inf }
 0x223   :  { %v585_v21 = vpop.f32.mrf.mxu1 }
 0x224   :  { %v617_v23 = vsel %vm604_vm5, %v585_v21, -inf }
 0x225   :  { %615 = vmax.xlane.f32.xlu0 %v614_v22  ;;  %618 = vmax.xlane.f32.xlu1 %v617_v23 }
 0x226   :  { %v1398_v24 = vpop.f32.mrf.mxu1 }
 0x227   :  { %v626_v29 = vsel %vm604_vm5, %v1398_v24, -inf }
 0x228   :  { %v595_v25 = vpop.f32.mrf.mxu1 }
 0x229   :  { %621 = vmax.xlane.f32.xlu0 %v620_v26  ;;  %v623_v28 = vsel %vm604_vm5, %v595_v25, -inf }
 0x22a   :  { %624 = vmax.xlane.f32.xlu1 %v623_v28 }
 0x22d   :  { %627 = vmax.xlane.f32.xlu0 %v626_v29 }
 0x2a4   :  { %v610_v33 = vpop.xlane.xlu1 %609 }
 0x2a5   :  { %v630_v34 = vsub.f32 %v1389_v13, %v610_v33  ;;  %v285_v13 = vld [vmem:[%s2013_s12 + $0x48] sm:$0xff] }
 0x2a6   :  { %v607_v35 = vpop.xlane.xlu0 %606  ;;  %1443 = vmatprep.subr.mxu1 %v285_v13 }
 0x2a7   :  { %v629_v36 = vsub.f32 %v565_v16, %v607_v35  ;;  %v639_v37 = vmul.f32 1.442695, %v630_v34  ;;  %1444 = vmatpush3.msra.mxu1 %v285_v13  ;;  %v283_v16 = vld [vmem:[%s2013_s12 + $0x38] sm:$0xff]  ;;  %v1219_v13 = vld [vmem:[%s2008_s7] ss:$0 sm:$0xff]  ;;  %s1562_s7 = smov [#allocation2]  }
 0x2a8   :  { %1445 = vmatprep.subr.mxu1 %v284_v14  ;;  %s1175_s19 = sshll.u32 %s1562_s7, 4  ;;  %s1176_s19 = int_to_ptr.vmem [resolvable:$true] %s1175_s19 }
 0x2a9   :  { %v637_v38 = vmul.f32 1.442695, %v629_v36  ;;  %1446 = vmatpush3.msra.mxu1 %v284_v14  ;;  %s1534_s20 = scalar_lea.vmem %s1176_s19, 1024  ;;  %p1539_p1 = scmp.lt.s32.totalorder %s1176_s19, %s1176_s19 }
 0x2aa   :  { %v613_v39 = vpop.xlane.xlu0 %612  ;;  %1447 = vmatprep.subr.mxu1 %v283_v16  ;;  %p1535_p0 = scmp.ne.s32.totalorder %s1176_s19, %s1534_s20  ;;  %p1540_p2 = scmp.lt.s32.totalorder %s1534_s20, %s1534_s20 }
 0x2ab   :  { %1502 = vpow2.f32 %v637_v38  ;;  %v631_v40 = vsub.f32 %v575_v18, %v613_v39  ;;  %1448 = vmatpush3.msra.mxu1 %v283_v16  ;;  %v280_v18 = vld [vmem:[%s2013_s12 + $0x20] sm:$0xff] }
 0x2ac   :  { %1504 = vpow2.f32 %v639_v37  ;;  %1449 = vmatprep.subr.mxu1 %v282_v17  ;;  %p1541_p3 = por %p1540_p2, %p1539_p1 }
 0x2ad   :  { %v641_v42 = vmul.f32 1.442695, %v631_v40  ;;  %1450 = vmatpush3.msra.mxu1 %v282_v17 }
 0x2ae   :  { %v619_v43 = vpop.xlane.xlu1 %618  ;;  %v616_v41 = vpop.xlane.xlu0 %615  ;;  %p1542_p4 = pnand %p1541_p3, %p1535_p0 }
 0x2af   :  { %1506 = vpow2.f32 %v641_v42  ;;  %v633_v44 = vsub.f32 %v585_v21, %v619_v43  ;;  %v632_v45 = vsub.f32 %v1392_v5, %v616_v41  ;;  %v281_v5 = vld [vmem:[%s2013_s12 + $0x28] sm:$0xff] }
 0x2b0   :  { %1451 = vmatprep.subr.mxu1 %v281_v5 }
 0x2b1   :  { %v645_v46 = vmul.f32 1.442695, %v633_v44  ;;  %v643_v47 = vmul.f32 1.442695, %v632_v45  ;;  %1452 = vmatpush3.msra.mxu1 %v281_v5 }
 0x2b2   :  { %v622_v48 = vpop.xlane.xlu0 %621  ;;  %1453 = vmatprep.subr.mxu1 %v280_v18 }
 0x2b3   :  { %1508 = vpow2.f32 %v645_v46  ;;  %v634_v49 = vsub.f32 %v1395_v20, %v622_v48  ;;  %v625_v50 = vpop.xlane.xlu1 %624  ;;  %1454 = vmatpush3.msra.mxu1 %v280_v18  ;;  %v278_v46 = vld [vmem:[%s2013_s12 + $0x10] sm:$0xff]  ;;  %v276_v48 = vld [vmem:[%s2013_s12] sm:$0xff] }
 0x2b4   :  { %1510 = vpow2.f32 %v643_v47  ;;  %v635_v51 = vsub.f32 %v595_v25, %v625_v50  ;;  %1455 = vmatprep.subr.mxu1 %v279_v19  ;;  %v277_v47 = vld [vmem:[%s2013_s12 + $0x8] sm:$0xff] }
 0x2b5   :  { %v647_v53 = vmul.f32 1.442695, %v634_v49  ;;  %1456 = vmatpush3.msra.mxu1 %v279_v19  ;;  %v1500_v49 = vld [vmem:[%s2007_s6 + $0x8] sm:$0xff]  }
 0x2b6   :  { %v649_v54 = vmul.f32 1.442695, %v635_v51  ;;  %v628_v55 = vpop.xlane.xlu0 %627  ;;  %1457 = vmatprep.subr.mxu1 %v278_v46 }
 0x2b7   :  { %1512 = vpow2.f32 %v647_v53  ;;  %v636_v56 = vsub.f32 %v1398_v24, %v628_v55  ;;  %1458 = vmatpush3.msra.mxu1 %v278_v46 }
 0x2b8   :  { %v1867_v57 = vpop.eup %1502  ;;  %1514 = vpow2.f32 %v649_v54  ;;  %1459 = vmatprep.subr.mxu1 %v277_v47 }
 0x2b9   :  { %v1869_v58 = vpop.eup %1504  ;;  %v651_v59 = vmul.f32 1.442695, %v636_v56  ;;  %1403 = vmatprep.mubr.msk.f32.mxu0 %vm604_vm5, %v1867_v57  ;;  %1460 = vmatpush3.msra.mxu1 %v277_v47 }
 0x2ba   :  { %1404 = vmatmul.mubr.msk.f32.vlgmr.msra.gmra.mxu0 %vm604_vm5, %v1869_v58  ;;  %1461 = vmatprep.subr.mxu1 %v276_v48 }
 0x2bb   :  { %1516 = vpow2.f32 %v651_v59  ;;  %1416 = vmatpush3.msra.mxu0 %v275_v4  ;;  %1462 = vmatpush3.msra.mxu1 %v276_v48 }
 0x2bc   :  { %v1875_v60 = vpop.eup %1506  ;;  %1417 = vmatprep.subr.mxu0 %v274_v3 }
 0x2bd   :  { %1406 = vmatprep.mubr.msk.f32.mxu0 %vm604_vm5, %v1875_v60  ;;  %1418 = vmatpush3.msra.mxu0 %v274_v3 }
 0x2be   :  { %1475 = vmatprep.subr.bf16.mxu0 %v1500_v49 }
 0x2c0   :  { %v1879_v61 = vpop.eup %1508 }
 0x2c1   :  { %v1881_v62 = vpop.eup %1510 }
 0x2c2   :  { %1407 = vmatmul.mubr.msk.f32.gmra.mxu0 %vm604_vm5, %v1881_v62 }
 0x2c3   :  { %1409 = vmatprep.mubr.msk.f32.mxu0 %vm604_vm5, %v1879_v61 }
 0x2c4   :  { %v1887_v63 = vpop.eup %1512 }
 0x2c5   :  { %v1889_v1 = vpop.eup %1514 }
 0x2c6   :  { %1410 = vmatmul.mubr.msk.f32.gmra.mxu0 %vm604_vm5, %v1887_v63 }
 0x2c7   :  { %1412 = vmatprep.mubr.msk.f32.mxu0 %vm604_vm5, %v1889_v1 }
 0x2c8   :  { %v1895_v2 = vpop.eup %1516 }
 0x2ca   :  { %1413 = vmatmul.mubr.msk.f32.gmra.mxu0 %vm604_vm5, %v1895_v2 }
 0x37a   :  { %v1405_v20 = vpop.f32.mrf.mxu0 }
 0x37b   :  { %1518 = vrcp.f32 %v1405_v20 }
 0x37c   :  { %v743_v21 = vpop.f32.mrf.mxu0 }
 0x37d   :  { %1520 = vrcp.f32 %v743_v21 }
 0x382   :  { %v1408_v22 = vpop.f32.mrf.mxu0 }
 0x383   :  { %1522 = vrcp.f32 %v1408_v22 }
 0x384   :  { %v753_v23 = vpop.f32.mrf.mxu0 }
 0x385   :  { %1524 = vrcp.f32 %v753_v23 }
 0x386   :  { %v1411_v24 = vpop.f32.mrf.mxu0 }
 0x387   :  { %1526 = vrcp.f32 %v1411_v24 }
 0x388   :  { %v763_v25 = vpop.f32.mrf.mxu0  ;;  %v1519_v26 = vpop.eup %1518 }
 0x389   :  { %1528 = vrcp.f32 %v763_v25  ;;  %v791_v32 = vmul.f32 %v1519_v26, %v1869_v58 }
 0x38a   :  { %v1521_v28 = vpop.eup %1520  ;;  %v1414_v29 = vpop.f32.mrf.mxu0 }
 0x38b   :  { %v790_v30 = vmul.f32 %v1521_v28, %v1867_v57  ;;  %1530 = vrcp.f32 %v1414_v29 }
 0x38c   :  { %v773_v33 = vpop.f32.mrf.mxu0 }
 0x38d   :  { %1532 = vrcp.f32 %v773_v33  ;;  %1419 = vmatprep.mubr.msk.f32.mxu0 %vm604_vm5, %v790_v30 }
 0x38e   :  { %1420 = vmatmul.mubr.msk.f32.vlgmr.msra.gmra.mxu0 %vm604_vm5, %v791_v32 }
 0x38f   :  { %1476 = vmatpush3.bf16.msra.mxu0 %v1500_v49 }
 0x390   :  { %v1523_v34 = vpop.eup %1522 }
 0x391   :  { %v793_v37 = vmul.f32 %v1523_v34, %v1881_v62 }
 0x392   :  { %v1525_v35 = vpop.eup %1524 }
 0x393   :  { %v792_v36 = vmul.f32 %v1525_v35, %v1875_v60 }
 0x394   :  { %v1527_v38 = vpop.eup %1526 }
 0x395   :  { %1422 = vmatprep.mubr.msk.f32.mxu0 %vm604_vm5, %v792_v36  ;;  %v795_v42 = vmul.f32 %v1527_v38, %v1887_v63 }
 0x396   :  { %v1529_v39 = vpop.eup %1528  ;;  %1423 = vmatmul.mubr.msk.f32.gmra.mxu0 %vm604_vm5, %v793_v37 }
 0x397   :  { %v794_v40 = vmul.f32 %v1529_v39, %v1879_v61 }
 0x398   :  { %v1531_v43 = vpop.eup %1530 }
 0x399   :  { %1425 = vmatprep.mubr.msk.f32.mxu0 %vm604_vm5, %v794_v40  ;;  %v797_v45 = vmul.f32 %v1531_v43, %v1895_v2 }
 0x39a   :  { %v1533_v41 = vpop.eup %1532  ;;  %1426 = vmatmul.mubr.msk.f32.gmra.mxu0 %vm604_vm5, %v795_v42 }
 0x39b   :  { %v796_v44 = vmul.f32 %v1533_v41, %v1889_v1 }
 0x39d   :  { %1428 = vmatprep.mubr.msk.f32.mxu0 %vm604_vm5, %v796_v44 }
 0x39e   :  { %1429 = vmatmul.mubr.msk.f32.gmra.mxu0 %vm604_vm5, %v797_v45 }
 0x44e   :  { %v1421_v50 = vpop.f32.mrf.mxu0 }
 0x44f   :  { %v946_v54 = vmul.f32 %v1421_v50, %v1833_v52 }
 0x450   :  { %v888_v51 = vpop.f32.mrf.mxu0 }
 0x451   :  { %v945_v53 = vmul.f32 %v1815_v31, %v888_v51 }
 0x453   :  { %1463 = vmatprep.mubr.f32.mxu1 %v945_v53 }
 0x454   :  { %1464 = vmatmul.mubr.f32.vlgmr.msra.gmra.mxu1 %v946_v54 }
 0x456   :  { %v1424_v55 = vpop.f32.mrf.mxu0 }
 0x457   :  { %v948_v58 = vmul.f32 %v1424_v55, %v1811_v27 }
 0x458   :  { %v898_v56 = vpop.f32.mrf.mxu0 }
 0x459   :  { %v947_v57 = vmul.f32 %v1799_v15, %v898_v56  ;;  %v1501_v15 = vld [vmem:[%s2007_s6] sm:$0xff]  }
 0x45a   :  { %v1427_v59 = vpop.f32.mrf.mxu0  ;;  %1477 = vmatprep.subr.bf16.mxu0 %v1501_v15 }
 0x45b   :  { %1466 = vmatprep.mubr.f32.mxu1 %v947_v57  ;;  %v950_v62 = vmul.f32 %v1427_v59, %v1843_v0  ;;  %1478 = vmatpush3.bf16.msra.mxu0 %v1501_v15 }
 0x45c   :  { %v908_v60 = vpop.f32.mrf.mxu0  ;;  %1467 = vmatmul.mubr.f32.gmra.mxu1 %v948_v58 }
 0x45d   :  { %v949_v61 = vmul.f32 %v1843_v0, %v908_v60 }
 0x45e   :  { %v1430_v63 = vpop.f32.mrf.mxu0 }
 0x45f   :  { %1469 = vmatprep.mubr.f32.mxu1 %v949_v61  ;;  %v952_v1 = vmul.f32 %v1430_v63, %v1851_v12 }
 0x460   :  { %v918_v31 = vpop.f32.mrf.mxu0  ;;  %1470 = vmatmul.mubr.f32.gmra.mxu1 %v950_v62 }
 0x461   :  { %v951_v52 = vmul.f32 %v1851_v12, %v918_v31 }
 0x463   :  { %1472 = vmatprep.mubr.f32.mxu1 %v951_v52 }
 0x464   :  { %1473 = vmatmul.mubr.f32.gmra.mxu1 %v952_v1 }
 0x514   :  { %v1465_v27 = vpop.f32.mrf.mxu1 }
 0x516   :  { %v1019_v2 = vpop.f32.mrf.mxu1 }
 0x517   :  { %v1058_v4 = vpack.c.bf16 %v1465_v27, %v1019_v2 }
 0x519   :  { %1479 = vmatprep.mubr.msk.bf16.mxu0 %vm77_vm0, %v1058_v4 }
 0x51c   :  { %v1468_v0 = vpop.f32.mrf.mxu1 }
 0x51e   :  { %v1029_v3 = vpop.f32.mrf.mxu1 }
 0x51f   :  { %v1059_v6 = vpack.c.bf16 %v1468_v0, %v1029_v3 }
 0x520   :  { %v1471_v7 = vpop.f32.mrf.mxu1 }
 0x521   :  { %1480 = vmatmul.mubr.msk.bf16.vlgmr.msra.gmra.mxu0 %vm77_vm0, %v1059_v6 }
 0x522   :  { %v1039_v12 = vpop.f32.mrf.mxu1 }
 0x523   :  { %v1060_v8 = vpack.c.bf16 %v1471_v7, %v1039_v12 }
 0x524   :  { %v1474_v9 = vpop.f32.mrf.mxu1 }
 0x525   :  { %1483 = vmatprep.mubr.msk.bf16.mxu0 %vm77_vm0, %v1060_v8 }
 0x526   :  { %v1049_v10 = vpop.f32.mrf.mxu1 }
 0x527   :  { %v1061_v11 = vpack.c.bf16 %v1474_v9, %v1049_v10 }
 0x529   :  { %1484 = vmatmul.mubr.msk.bf16.gmra.mxu0 %vm77_vm0, %v1061_v11 }
 0x5e1   :  { %v1481_v14 = vpop.f32.mrf.mxu0 }
 0x5e2   :  { %v1140_v16 = vadd.f32 %v1481_v14, %v1219_v13 }
 0x5e3   :  { %v1131_v17 = vpop.f32.mrf.mxu0 }
 0x5e4   :  { %1164 = vst.msk [vmem:[#allocation2 + $0x10] sm:$0xff] %vm77_vm0, %v1140_v16  ;;  %v1132_v5 = vadd.f32 %v1219_v13, %v1131_v17 }
 0x5e5   :  { %v1482_v18 = vpop.f32.mrf.mxu0 }
 0x5e6   :  { %1162 = vst.msk [vmem:[#allocation2] sm:$0xff] %vm77_vm0, %v1132_v5  ;;  %v1143_v19 = vadd.f32 %v1482_v18, %v1219_v13 }
 0x5e7   :  { %v1134_v20 = vpop.f32.mrf.mxu0 }
 0x5e8   :  { %1165 = vst.msk [vmem:[#allocation2 + $0x18] sm:$0xff] %vm77_vm0, %v1143_v19  ;;  %v1135_v21 = vadd.f32 %v1219_v13, %v1134_v20 }
 0x5e9   :  { %v1485_v22 = vpop.f32.mrf.mxu0 }
 0x5ea   :  { %1163 = vst.msk [vmem:[#allocation2 + $0x8] sm:$0xff] %vm77_vm0, %v1135_v21  ;;  %v1156_v23 = vadd.f32 %v1485_v22, %v1219_v13 }
 0x5eb   :  { %v1147_v24 = vpop.f32.mrf.mxu0 }
 0x5ec   :  { %1168 = vst.msk [vmem:[#allocation2 + $0x30] sm:$0xff] %vm77_vm0, %v1156_v23  ;;  %v1148_v25 = vadd.f32 %v1219_v13, %v1147_v24 }
 0x5ed   :  { %v1486_v26 = vpop.f32.mrf.mxu0 }
 0x5ee   :  { %1166 = vst.msk [vmem:[#allocation2 + $0x20] sm:$0xff] %vm77_vm0, %v1148_v25  ;;  %v1159_v28 = vadd.f32 %v1486_v26, %v1219_v13 }
 0x5ef   :  { %v1150_v29 = vpop.f32.mrf.mxu0 }
 0x5f0   :  { %1169 = vst.msk [vmem:[#allocation2 + $0x38] sm:$0xff] %vm77_vm0, %v1159_v28  ;;  %v1151_v30 = vadd.f32 %v1219_v13, %v1150_v29 }
 0x5f2   :  { %1167 = vst.msk [vmem:[#allocation2 + $0x28] sm:$0xff] %vm77_vm0, %v1151_v30 }
 0x5f3   :  { %1545 = shalt.err (!%p1542_p4)
}
 0x5f4   :  { %s1563_s21 = smov 128   ;;  %s1564_s22 = smov 8  }
 0x5f5   :  { %1181 = dma.vmem_to_hbm [thread:$0]  %s1176_s19, 1024, %s2014_s13, [#allocation3], %s1563_s21, %s1563_s21, %s1564_s22  }
 0x5f6   :  { %1554 = dma.done.wait [#allocation3], 1024  }
 0x5f7   :  { %1555 = vsyncadd [#allocation3], 4294966272 }
 0x5f8   :  { %1185 = vsyncpa [#allocation3], 1 }

</bundles_post_ra>
